<compile_context>
chip_gen: v5e
topology: v5e:2x2
jax: 0.10.0
libtpu: 0.0.40
codegen_flags: <defaults>
</compile_context>

<pallas_src>
import functools

import jax
import jax.numpy as jnp
from jax.experimental import pallas as pl
from jax.experimental.pallas import tpu as pltpu

LANE = 128
SUBLANE = 8
MAX_TILE_ROWS = 2048   # (2048, 128) f32 tile = 1 MiB; 2 inputs x 2 buffers = 4 MiB VMEM
MAX_SPLIT = 2          # leading "parallel" grid axis (2 TCs on v7x / megacore)


def _dice_bce_kernel(x_ref, t_ref, o_ref, *,
                     tile_rows, tiles_per_core, n_real, need_mask):
    c = pl.program_id(0)   # core-split index ("parallel")
    i = pl.program_id(1)   # tile index within the split ("arbitrary": reduction)

    @pl.when(i == 0)
    def _():
        o_ref[...] = jnp.zeros_like(o_ref)

    x = x_ref[...].astype(jnp.float32)
    t = t_ref[...].astype(jnp.float32)

    if need_mask:
        # Global element index (int32: fine for < 2^31 elements).
        tile_idx = c * tiles_per_core + i          # logical (unclamped) tile index
        row = jax.lax.broadcasted_iota(jnp.int32, (tile_rows, LANE), 0)
        col = jax.lax.broadcasted_iota(jnp.int32, (tile_rows, LANE), 1)
        gidx = (tile_idx * tile_rows + row) * LANE + col
        mask = gidx < n_real
        maskf = mask.astype(jnp.float32)
        # Zero any garbage (pad / edge-block / phantom-tile data) before the
        # transcendentals so nothing non-finite can propagate.
        x = jnp.where(mask, x, 0.0)
        t = t * maskf

    # Stable sigmoid + log-sigmoid, matching torch.binary_cross_entropy's
    # clamp(log, -100):
    e = jnp.exp(-jnp.abs(x))          # EUP
    one_plus_e = 1.0 + e
    inv = 1.0 / one_plus_e
    p = jnp.where(x >= 0, inv, e * inv)                     # sigmoid(x)
    log1pe = jnp.log(one_plus_e)                            # EUP
    log_p = jnp.maximum(jnp.minimum(x, 0.0) - log1pe, -100.0)
    log_1mp = jnp.maximum(-jnp.maximum(x, 0.0) - log1pe, -100.0)
    bce = -(t * log_p + (1.0 - t) * log_1mp)

    if need_mask:
        p = p * maskf        # t already masked -> intersection / sum_t safe
        bce = bce * maskf

    def _fold(v):
        # (tile_rows, 128) -> (8, 128): vreg-shaped VPU adds only, no XLU.
        return v.reshape(-1, SUBLANE, LANE).sum(axis=0)

    # Output block is resident across the "arbitrary" axis -> accumulator.
    o_ref[0:8, :] += _fold(p * t)     # intersection
    o_ref[8:16, :] += _fold(p)        # sum sigmoid(x)
    o_ref[16:24, :] += _fold(t)       # sum targets
    o_ref[24:32, :] += _fold(bce)     # sum BCE


def dice_bce_loss(inputs, targets, smooth=1.0):
    x = inputs.reshape(-1)            # native dtype, no upcast in the wrapper
    t = targets.reshape(-1)
    n = x.shape[0]

    # Pad the flat stream to a multiple of 8*128 so every block is a full
    # (8,128)-tiled rectangle (pad copy only when needed; tail is masked).
    chunk = SUBLANE * LANE
    if n % chunk:
        pad = chunk - (n % chunk)
        x = jnp.pad(x, (0, pad))
        t = jnp.pad(t, (0, pad))
    rows = x.shape[0] // LANE
    x2 = x.reshape(rows, LANE)
    t2 = t.reshape(rows, LANE)

    tile_rows = min(MAX_TILE_ROWS, rows)              # multiple of 8
    num_tiles = pl.cdiv(rows, tile_rows)
    num_split = MAX_SPLIT if num_tiles >= MAX_SPLIT else 1
    tiles_per_core = pl.cdiv(num_tiles, num_split)
    covered = num_split * tiles_per_core * tile_rows * LANE
    need_mask = covered != n

    def in_index_map(c, i):
        # Clamp so phantom tiles (core-split remainder) keep an in-bounds DMA
        # start; their contribution is masked to zero in the kernel.
        return (jnp.minimum(c * tiles_per_core + i, num_tiles - 1), 0)

    kernel = functools.partial(
        _dice_bce_kernel,
        tile_rows=tile_rows,
        tiles_per_core=tiles_per_core,
        n_real=n,
        need_mask=need_mask,
    )

    out_rows = 4 * SUBLANE            # 4 accumulators of (8, 128) per split
    in_bytes = x2.size * x2.dtype.itemsize + t2.size * t2.dtype.itemsize

    partials = pl.pallas_call(
        kernel,
        out_shape=jax.ShapeDtypeStruct((num_split * out_rows, LANE), jnp.float32),
        grid_spec=pltpu.PrefetchScalarGridSpec(
            num_scalar_prefetch=0,
            grid=(num_split, tiles_per_core),
            in_specs=[
                pl.BlockSpec((tile_rows, LANE), in_index_map),
                pl.BlockSpec((tile_rows, LANE), in_index_map),
            ],
            out_specs=pl.BlockSpec((out_rows, LANE), lambda c, i: (c, 0)),
        ),
        compiler_params=pltpu.CompilerParams(
            dimension_semantics=("parallel", "arbitrary")),
        cost_estimate=pl.CostEstimate(
            flops=20 * n,
            transcendentals=2 * n,
            bytes_accessed=in_bytes + num_split * out_rows * LANE * 4),
    )(x2, t2)

    # Tiny combine of per-core partial vreg accumulators in the wrapper.
    sums = partials.reshape(num_split, 4, SUBLANE, LANE).sum(axis=(0, 2, 3))
    intersection, sum_p, sum_t, bce_sum = sums[0], sums[1], sums[2], sums[3]
    dice_loss = 1.0 - (2.0 * intersection + smooth) / (sum_p + sum_t + smooth)
    bce_mean = bce_sum / n
    return bce_mean + dice_loss


def _reference(inputs, targets, smooth=1.0):
    # Pure-JAX replica of the torch module (probability-space BCE, clamp -100).
    p = jax.nn.sigmoid(inputs.reshape(-1).astype(jnp.float32))
    t = targets.reshape(-1).astype(jnp.float32)
    inter = jnp.sum(p * t)
    dice = 1.0 - (2.0 * inter + smooth) / (jnp.sum(p) + jnp.sum(t) + smooth)
    log_p = jnp.maximum(jnp.log(p), -100.0)
    log_1mp = jnp.maximum(jnp.log(1.0 - p), -100.0)
    bce = jnp.mean(-(t * log_p + (1.0 - t) * log_1mp))
    return bce + dice


if __name__ == "__main__":
    key = jax.random.PRNGKey(0)
    k1, k2, k3, k4, k5, k6 = jax.random.split(key, 6)

    # Case 1: segmentation-style shape, (8*128)-aligned element count
    # (no pad copy, no in-kernel masking).
    logits = jax.random.normal(k1, (2, 4, 16, 16), dtype=jnp.float32)
    targets = (jax.random.uniform(k2, (2, 4, 16, 16)) > 0.5).astype(jnp.float32)
    loss = dice_bce_loss(logits, targets, smooth=1.0)
    jax.block_until_ready(loss)
    ref = _reference(logits, targets, smooth=1.0)
    assert jnp.allclose(loss, ref, rtol=1e-4, atol=1e-4), (loss, ref)

    # Case 2: ragged element count + bf16 logits (exercises pad + mask path,
    # native-dtype streaming).
    logits2 = jax.random.normal(k3, (2, 3, 7, 11), dtype=jnp.bfloat16)
    targets2 = (jax.random.uniform(k4, (2, 3, 7, 11)) > 0.5).astype(jnp.float32)
    loss2 = dice_bce_loss(logits2, targets2, smooth=1.0)
    jax.block_until_ready(loss2)
    ref2 = _reference(logits2, targets2, smooth=1.0)
    assert jnp.allclose(loss2, ref2, rtol=1e-4, atol=1e-4), (loss2, ref2)

    # Case 3: larger input exercising the multi-tile, 2-way "parallel"
    # core-split path (2 tiles of (2048, 128), exact coverage, no masking).
    logits3 = jax.random.normal(k5, (4, 4, 128, 256), dtype=jnp.float32)
    targets3 = (jax.random.uniform(k6, (4, 4, 128, 256)) > 0.5).astype(jnp.float32)
    loss3 = dice_bce_loss(logits3, targets3, smooth=1.0)
    jax.block_until_ready(loss3)
    ref3 = _reference(logits3, targets3, smooth=1.0)
    assert jnp.allclose(loss3, ref3, rtol=1e-4, atol=1e-4), (loss3, ref3)

    print("KERNEL_OK")
</pallas_src>

<mosaic_0001>
module attributes {stable_mosaic.version = 11 : i64} {
  func.func @_dice_bce_kernel(%arg0: i32, %arg1: i32, %arg2: memref<16x128xf32, #tpu.memory_space<vmem>>, %arg3: memref<16x128xf32, #tpu.memory_space<vmem>>, %arg4: memref<32x128xf32, #tpu.memory_space<vmem>>) attributes {dimension_semantics = [#tpu.dimension_semantics<parallel>, #tpu.dimension_semantics<arbitrary>], iteration_bounds = array<i64: 1, 1>, scalar_prefetch = 0 : i64, scratch_operands = 0 : i64, tpu.core_type = #tpu.core_type<tc>, window_params = [{transform_indices = @transform_0, window_bounds = array<i64: 16, 128>}, {transform_indices = @transform_1, window_bounds = array<i64: 16, 128>}, {transform_indices = @transform_2, window_bounds = array<i64: 32, 128>}]} {
    %c0_i32 = arith.constant 0 : i32
    %0 = arith.cmpi eq, %arg1, %c0_i32 : i32
    %1 = arith.extui %0 : i1 to i32
    %c0_i32_0 = arith.constant 0 : i32
    %2 = arith.cmpi ne, %1, %c0_i32_0 : i32
    scf.if %2 {
      %cst_31 = arith.constant 0.000000e+00 : f32
      %58 = vector.broadcast %cst_31 : f32 to vector<32x128xf32>
      %c0_32 = arith.constant 0 : index
      %c0_33 = arith.constant 0 : index
      %59 = vector.load %arg4[%c0_32, %c0_33] : memref<32x128xf32, #tpu.memory_space<vmem>>, vector<32x128xf32>
      tpu.vector_store %arg4[%c0_32, %c0_33], %58 {strides = array<i32>} : memref<32x128xf32, #tpu.memory_space<vmem>>, vector<32x128xf32>,
    } else {
    }
    %c0 = arith.constant 0 : index
    %c0_1 = arith.constant 0 : index
    %3 = vector.load %arg2[%c0, %c0_1] : memref<16x128xf32, #tpu.memory_space<vmem>>, vector<16x128xf32>
    %c0_2 = arith.constant 0 : index
    %c0_3 = arith.constant 0 : index
    %4 = vector.load %arg3[%c0_2, %c0_3] : memref<16x128xf32, #tpu.memory_space<vmem>>, vector<16x128xf32>
    %5 = math.absf %3 : vector<16x128xf32>
    %cst = arith.constant 0.000000e+00 : f32
    %6 = vector.broadcast %cst : f32 to vector<16x128xf32>
    %7 = arith.subf %6, %5 : vector<16x128xf32>
    %8 = math.exp %7 : vector<16x128xf32>
    %cst_4 = arith.constant 1.000000e+00 : f32
    %9 = vector.broadcast %cst_4 : f32 to vector<16x128xf32>
    %10 = arith.addf %9, %8 : vector<16x128xf32>
    %cst_5 = arith.constant 1.000000e+00 : f32
    %11 = vector.broadcast %cst_5 : f32 to vector<16x128xf32>
    %12 = arith.divf %11, %10 : vector<16x128xf32>
    %cst_6 = arith.constant 0.000000e+00 : f32
    %13 = vector.broadcast %cst_6 : f32 to vector<16x128xf32>
    %14 = arith.cmpf oge, %3, %13 : vector<16x128xf32>
    %15 = arith.mulf %8, %12 : vector<16x128xf32>
    %16 = arith.select %14, %12, %15 : vector<16x128xi1>, vector<16x128xf32>
    %17 = math.log %10 : vector<16x128xf32>
    %cst_7 = arith.constant 0.000000e+00 : f32
    %18 = vector.broadcast %cst_7 : f32 to vector<16x128xf32>
    %19 = arith.minimumf %3, %18 : vector<16x128xf32>
    %20 = arith.subf %19, %17 : vector<16x128xf32>
    %cst_8 = arith.constant -1.000000e+02 : f32
    %21 = vector.broadcast %cst_8 : f32 to vector<16x128xf32>
    %22 = arith.maximumf %20, %21 : vector<16x128xf32>
    %cst_9 = arith.constant 0.000000e+00 : f32
    %23 = vector.broadcast %cst_9 : f32 to vector<16x128xf32>
    %24 = arith.maximumf %3, %23 : vector<16x128xf32>
    %cst_10 = arith.constant 0.000000e+00 : f32
    %25 = vector.broadcast %cst_10 : f32 to vector<16x128xf32>
    %26 = arith.subf %25, %24 : vector<16x128xf32>
    %27 = arith.subf %26, %17 : vector<16x128xf32>
    %cst_11 = arith.constant -1.000000e+02 : f32
    %28 = vector.broadcast %cst_11 : f32 to vector<16x128xf32>
    %29 = arith.maximumf %27, %28 : vector<16x128xf32>
    %30 = arith.mulf %4, %22 : vector<16x128xf32>
    %cst_12 = arith.constant 1.000000e+00 : f32
    %31 = vector.broadcast %cst_12 : f32 to vector<16x128xf32>
    %32 = arith.subf %31, %4 : vector<16x128xf32>
    %33 = arith.mulf %32, %29 : vector<16x128xf32>
    %34 = arith.addf %30, %33 : vector<16x128xf32>
    %cst_13 = arith.constant 0.000000e+00 : f32
    %35 = vector.broadcast %cst_13 : f32 to vector<16x128xf32>
    %36 = arith.subf %35, %34 : vector<16x128xf32>
    %c0_14 = arith.constant 0 : index
    %c0_15 = arith.constant 0 : index
    %37 = vector.load %arg4[%c0_14, %c0_15] : memref<32x128xf32, #tpu.memory_space<vmem>>, vector<8x128xf32>
    %38 = arith.mulf %16, %4 : vector<16x128xf32>
    %39 = vector.shape_cast %38 : vector<16x128xf32> to vector<2x8x128xf32>
    %cst_16 = arith.constant dense<0.000000e+00> : vector<8x128xf32>
    %40 = vector.multi_reduction <add>, %39, %cst_16 [0] : vector<2x8x128xf32> to vector<8x128xf32>
    %41 = arith.addf %37, %40 : vector<8x128xf32>
    %c0_17 = arith.constant 0 : index
    %c0_18 = arith.constant 0 : index
    %42 = vector.load %arg4[%c0_17, %c0_18] : memref<32x128xf32, #tpu.memory_space<vmem>>, vector<8x128xf32>
    tpu.vector_store %arg4[%c0_17, %c0_18], %41 {strides = array<i32>} : memref<32x128xf32, #tpu.memory_space<vmem>>, vector<8x128xf32>,
    %c8 = arith.constant 8 : index
    %c0_19 = arith.constant 0 : index
    %43 = vector.load %arg4[%c8, %c0_19] : memref<32x128xf32, #tpu.memory_space<vmem>>, vector<8x128xf32>
    %44 = vector.shape_cast %16 : vector<16x128xf32> to vector<2x8x128xf32>
    %cst_20 = arith.constant dense<0.000000e+00> : vector<8x128xf32>
    %45 = vector.multi_reduction <add>, %44, %cst_20 [0] : vector<2x8x128xf32> to vector<8x128xf32>
    %46 = arith.addf %43, %45 : vector<8x128xf32>
    %c8_21 = arith.constant 8 : index
    %c0_22 = arith.constant 0 : index
    %47 = vector.load %arg4[%c8_21, %c0_22] : memref<32x128xf32, #tpu.memory_space<vmem>>, vector<8x128xf32>
    tpu.vector_store %arg4[%c8_21, %c0_22], %46 {strides = array<i32>} : memref<32x128xf32, #tpu.memory_space<vmem>>, vector<8x128xf32>,
    %c16 = arith.constant 16 : index
    %c0_23 = arith.constant 0 : index
    %48 = vector.load %arg4[%c16, %c0_23] : memref<32x128xf32, #tpu.memory_space<vmem>>, vector<8x128xf32>
    %49 = vector.shape_cast %4 : vector<16x128xf32> to vector<2x8x128xf32>
    %cst_24 = arith.constant dense<0.000000e+00> : vector<8x128xf32>
    %50 = vector.multi_reduction <add>, %49, %cst_24 [0] : vector<2x8x128xf32> to vector<8x128xf32>
    %51 = arith.addf %48, %50 : vector<8x128xf32>
    %c16_25 = arith.constant 16 : index
    %c0_26 = arith.constant 0 : index
    %52 = vector.load %arg4[%c16_25, %c0_26] : memref<32x128xf32, #tpu.memory_space<vmem>>, vector<8x128xf32>
    tpu.vector_store %arg4[%c16_25, %c0_26], %51 {strides = array<i32>} : memref<32x128xf32, #tpu.memory_space<vmem>>, vector<8x128xf32>,
    %c24 = arith.constant 24 : index
    %c0_27 = arith.constant 0 : index
    %53 = vector.load %arg4[%c24, %c0_27] : memref<32x128xf32, #tpu.memory_space<vmem>>, vector<8x128xf32>
    %54 = vector.shape_cast %36 : vector<16x128xf32> to vector<2x8x128xf32>
    %cst_28 = arith.constant dense<0.000000e+00> : vector<8x128xf32>
    %55 = vector.multi_reduction <add>, %54, %cst_28 [0] : vector<2x8x128xf32> to vector<8x128xf32>
    %56 = arith.addf %53, %55 : vector<8x128xf32>
    %c24_29 = arith.constant 24 : index
    %c0_30 = arith.constant 0 : index
    %57 = vector.load %arg4[%c24_29, %c0_30] : memref<32x128xf32, #tpu.memory_space<vmem>>, vector<8x128xf32>
    tpu.vector_store %arg4[%c24_29, %c0_30], %56 {strides = array<i32>} : memref<32x128xf32, #tpu.memory_space<vmem>>, vector<8x128xf32>,
    return
  }
  func.func @transform_0(%arg0: i32, %arg1: i32) -> (i32, i32) {
    %c1_i32 = arith.constant 1 : i32
    %0 = arith.muli %arg0, %c1_i32 : i32
    %1 = arith.addi %0, %arg1 : i32
    %c0_i32 = arith.constant 0 : i32
    %2 = arith.minsi %1, %c0_i32 : i32
    %c0_i32_0 = arith.constant 0 : i32
    %c0_i32_1 = arith.constant 0 : i32
    return %2, %c0_i32_0 : i32, i32
  }
  func.func @transform_1(%arg0: i32, %arg1: i32) -> (i32, i32) {
    %c1_i32 = arith.constant 1 : i32
    %0 = arith.muli %arg0, %c1_i32 : i32
    %1 = arith.addi %0, %arg1 : i32
    %c0_i32 = arith.constant 0 : i32
    %2 = arith.minsi %1, %c0_i32 : i32
    %c0_i32_0 = arith.constant 0 : i32
    %c0_i32_1 = arith.constant 0 : i32
    return %2, %c0_i32_0 : i32, i32
  }
  func.func @transform_2(%arg0: i32, %arg1: i32) -> (i32, i32) {
    %c0_i32 = arith.constant 0 : i32
    %c0_i32_0 = arith.constant 0 : i32
    return %arg0, %c0_i32 : i32, i32
  }
}

</mosaic_0001>

<bundles_post_ra>
// kernel: tpu_custom_call.1
= control target key start
LH: loop header
LB: loop body
LE: loop exit
PB: predicated region body
PF: predicated region fallthrough
CT: control target
= control target key end

     0   :  { %7 = vsyncpa [#allocation3], 0  ;;  %s374_s0 = inlined_call_operand.hbm [shape: f32[16,128], index: 0, kind: input, shape index: {}]   ;;  %s375_s1 = inlined_call_operand.hbm [shape: f32[16,128], index: 1, kind: input, shape index: {}]   ;;  %s376_s2 = inlined_call_operand.hbm [shape: f32[32,128], index: 2, kind: output, shape index: {}]  }
   0x1   :  { %8 = vsyncpa [#allocation6], 0 }
   0x2   :  { %9 = vsyncpa [#allocation4], 0  ;;  %s20_s11 = sshll.u32 %s374_s0, 4  ;;  %s288_s12 = smov [#allocation2]   ;;  %s21_s11 = int_to_ptr.hbm [resolvable:$true] %s20_s11 }
   0x3   :  { %s22_s13 = sshll.u32 %s288_s12, 4  ;;  %s39_s16 = sshll.u32 %s375_s1, 4  ;;  %s23_s13 = int_to_ptr.vmem [resolvable:$true] %s22_s13  ;;  %s40_s16 = int_to_ptr.hbm [resolvable:$true] %s39_s16 }
   0x4   :  { %s289_s17 = smov 128   ;;  %s290_s18 = smov 8  }
   0x5   :  { %28 = dma.hbm_to_vmem [thread:$0]  %s21_s11, 256, %s23_s13, [#allocation3], %s289_s17, %s289_s17, %s290_s18  }
   0x6   :  { %s291_s19 = smov [#allocation5]  }
   0x7   :  { %s41_s20 = sshll.u32 %s291_s19, 4  ;;  %s42_s20 = int_to_ptr.vmem [resolvable:$true] %s41_s20 }
   0x8   :  { %47 = dma.hbm_to_vmem [thread:$0]  %s40_s16, 256, %s42_s20, [#allocation6], %s289_s17, %s289_s17, %s290_s18  }
   0x9   :  { %282 = dma.done.wait [#allocation3], 256  }
   0xa   :  { %283 = vsyncadd [#allocation3], 4294967040 }
   0xb   :  { %284 = dma.done.wait [#allocation6], 256  }
   0xc   :  { %285 = vsyncadd [#allocation6], 4294967040  ;;  %v320_v0 = vld [vmem:[#allocation2] sm:$0xff]  ;;  %v322_v1 = vld [vmem:[#allocation2 + $0x8] sm:$0xff]  ;;  %s292_s0 = smov [#allocation7]   ;;  %s174_s23 = sshll.u32 %s376_s2, 4  ;;  %s175_s23 = int_to_ptr.hbm [resolvable:$true] %s174_s23 }
   0xd   :  { %v76_v2 = vand.u32 2147483647, %v320_v0  ;;  %v77_v3 = vand.u32 2147483647, %v322_v1  ;;  %v326_v8 = vld [vmem:[#allocation5] sm:$0xff]  ;;  %v328_v9 = vld [vmem:[#allocation5 + $0x8] sm:$0xff] }
   0xe   :  { %v161_v10 = vadd.f32 %v328_v9, %v326_v8  ;;  %v132_v15 = vmax.f32 %v320_v0, 0.0  ;;  %v133_v16 = vmax.f32 %v322_v1, 0.0  ;;  %v126_v18 = vmin.f32 %v320_v0, 0.0  ;;  %s172_s1 = sshll.u32 %s292_s0, 4  ;;  %s173_s1 = int_to_ptr.vmem [resolvable:$true] %s172_s1 }
   0xf   :  { %v78_v4 = vsub.f32 0.0, %v76_v2  ;;  %v79_v5 = vsub.f32 0.0, %v77_v3  ;;  %v127_v19 = vmin.f32 %v322_v1, 0.0  ;;  %v142_v21 = vsub.f32 1.0, %v326_v8 }
  0x10   :  { %163 = vst [vmem:[#allocation7 + $0x10] sm:$0xff] %v161_v10  ;;  %v134_v20 = vsub.f32 0.0, %v132_v15  ;;  %v135_v25 = vsub.f32 0.0, %v133_v16  ;;  %v143_v26 = vsub.f32 1.0, %v328_v9  ;;  %vm116_vm8 = vcmp.ge.f32.partialorder %v320_v0, 0.0 }
  0x11   :  { %v80_v6 = vmul.f32 1.442695, %v78_v4  ;;  %v82_v7 = vmul.f32 1.442695, %v79_v5  ;;  %vm117_vm9 = vcmp.ge.f32.partialorder %v322_v1, 0.0 }
  0x13   :  { %198 = vpow2.f32 %v80_v6 }
  0x14   :  { %200 = vpow2.f32 %v82_v7 }
  0x19   :  { %v199_v11 = vpop.eup %198 }
  0x1a   :  { %v332_v12 = vpop.eup %200  ;;  %v84_v13 = vadd.f32 1.0, %v199_v11 }
  0x1b   :  { %v85_v14 = vadd.f32 1.0, %v332_v12 }
  0x1c   :  { %202 = vrcp.f32 %v84_v13  ;;  %v95_v24 = vand.u32 2147483647, %v84_v13  ;;  %vm91_vm0 = vweird.f32 %v84_v13  ;;  %v97_v28 = vand.u32 2147483648, %v84_v13 }
  0x1d   :  { %204 = vrcp.f32 %v85_v14  ;;  %vm106_vm1 = vweird.f32 %v85_v14  ;;  %v112_v32 = vand.u32 2147483648, %v85_v14  ;;  %v110_v35 = vand.u32 2147483647, %v85_v14 }
  0x1e   :  { %206 = vlog2.f32 %v84_v13  ;;  %vm341_vm4 = vcmp.eq.f32.partialorder %v95_v24, 8.507059e+37  ;;  %v98_v42 = vor.u32 1.1754944e-38, %v97_v28 }
  0x1f   :  { %208 = vlog2.f32 %v85_v14  ;;  %v113_v48 = vor.u32 1.1754944e-38, %v112_v32  ;;  %vm111_vm7 = vcmp.eq.f32.partialorder %v110_v35, 8.507059e+37 }
  0x22   :  { %v203_v17 = vpop.eup %202 }
  0x23   :  { %v205_v22 = vpop.eup %204  ;;  %v87_v23 = vmul.f32 %v203_v17, %v84_v13  ;;  %vm92_vm2 = vweird.f32 %v203_v17 }
  0x24   :  { %v207_v27 = vpop.eup %206  ;;  %v102_v29 = vmul.f32 %v205_v22, %v85_v14  ;;  %vm107_vm3 = vweird.f32 %v205_v22  ;;  %vm346_vm5 = vmor %vm91_vm0, %vm92_vm2 }
  0x25   :  { %v209_v30 = vpop.eup %208  ;;  %v88_v31 = vsub.f32 1.0, %v87_v23  ;;  %v123_v33 = vmul.f32 0.6931472, %v207_v27  ;;  %vm351_vm6 = vmor %vm106_vm1, %vm107_vm3 }
  0x26   :  { %v103_v34 = vsub.f32 1.0, %v102_v29  ;;  %v125_v36 = vmul.f32 0.6931472, %v209_v30 }
  0x27   :  { %v89_v37 = vmul.f32 %v203_v17, %v88_v31  ;;  %v128_v39 = vsub.f32 %v126_v18, %v123_v33  ;;  %v136_v40 = vsub.f32 %v134_v20, %v123_v33 }
  0x28   :  { %v104_v43 = vmul.f32 %v205_v22, %v103_v34  ;;  %v129_v44 = vsub.f32 %v127_v19, %v125_v36  ;;  %v137_v45 = vsub.f32 %v135_v25, %v125_v36 }
  0x29   :  { %v90_v46 = vadd.f32 %v203_v17, %v89_v37  ;;  %v130_v49 = vmax.f32 %v128_v39, -100.0  ;;  %v138_v50 = vmax.f32 %v136_v40, -100.0 }
  0x2a   :  { %v105_v51 = vadd.f32 %v205_v22, %v104_v43  ;;  %v131_v52 = vmax.f32 %v129_v44, -100.0  ;;  %v139_v53 = vmax.f32 %v137_v45, -100.0 }
  0x2b   :  { %v94_v54 = vsel %vm346_vm5, %v203_v17, %v90_v46  ;;  %v140_v55 = vmul.f32 %v130_v49, %v326_v8  ;;  %v144_v56 = vmul.f32 %v142_v21, %v138_v50 }
  0x2c   :  { %v99_v57 = vsel %vm341_vm4, %v98_v42, %v94_v54  ;;  %v109_v58 = vsel %vm351_vm6, %v205_v22, %v105_v51  ;;  %v141_v59 = vmul.f32 %v131_v52, %v328_v9  ;;  %v145_v60 = vmul.f32 %v143_v26, %v139_v53 }
  0x2d   :  { %v114_v61 = vsel %vm111_vm7, %v113_v48, %v109_v58  ;;  %v118_v62 = vmul.f32 %v199_v11, %v99_v57  ;;  %v146_v63 = vadd.f32 %v144_v56, %v140_v55 }
  0x2e   :  { %v119_v2 = vmul.f32 %v332_v12, %v114_v61  ;;  %v147_v0 = vadd.f32 %v145_v60, %v141_v59 }
  0x2f   :  { %v120_v3 = vsel %vm116_vm8, %v99_v57, %v118_v62  ;;  %v148_v4 = vsub.f32 0.0, %v146_v63 }
  0x30   :  { %v121_v5 = vsel %vm117_vm9, %v114_v61, %v119_v2  ;;  %v151_v6 = vmul.f32 %v120_v3, %v326_v8  ;;  %v149_v7 = vsub.f32 0.0, %v147_v0 }
  0x31   :  { %v152_v10 = vmul.f32 %v121_v5, %v328_v9  ;;  %v157_v13 = vadd.f32 %v121_v5, %v120_v3 }
  0x32   :  { %v165_v14 = vadd.f32 %v149_v7, %v148_v4 }
  0x33   :  { %v153_v1 = vadd.f32 %v152_v10, %v151_v6  ;;  %159 = vst [vmem:[#allocation7 + $0x8] sm:$0xff] %v157_v13 }
  0x34   :  { %167 = vst [vmem:[#allocation7 + $0x18] sm:$0xff] %v165_v14 }
  0x35   :  { %155 = vst [vmem:[#allocation7] sm:$0xff] %v153_v1 }
  0x36   :  { %180 = dma.vmem_to_hbm [thread:$0]  %s173_s1, 512, %s175_s23, [#allocation4], %s289_s17, %s289_s17, %s290_s18  }
  0x37   :  { %286 = dma.done.wait [#allocation4], 512  }
  0x38   :  { %287 = vsyncadd [#allocation4], 4294966784 }
  0x39   :  { %185 = vsyncpa [#allocation3], 1 }
  0x3a   :  { %186 = vsyncpa [#allocation6], 1 }
  0x3b   :  { %187 = vsyncpa [#allocation4], 1 }

</bundles_post_ra>
